<compile_context>
chip_gen: v5e
topology: v5e:2x2
jax: 0.10.0
libtpu: 0.0.40
codegen_flags: <defaults>
</compile_context>

<pallas_src>
import functools

import jax
import jax.numpy as jnp
from jax.experimental import pallas as pl
from jax.experimental.pallas import tpu as pltpu


def _ceil_div(a: int, b: int) -> int:
    return -(-a // b)


def _round_up(n: int, m: int) -> int:
    return _ceil_div(n, m) * m


def _make_mlp_kernel(num_layers: int):
    """Kernel body. Ref order: (x, W0^T, b0, ..., w_last_col, b_last, out).

    x_ref:  (tb, input_dim)           compute dtype (batch-major stream)
    Wi^T:   (out_i, in_i)             compute dtype (VMEM resident)
    bi:     (out_i, 1)                f32
    w_last: (hidden_last, 1)          f32
    b_last: (1, 1)                    f32
    out:    (1, 1, tb)                f32  (lane-dense row: batch in lanes)
    """

    def kernel(*refs):
        x_ref = refs[0]
        o_ref = refs[-1]
        p = refs[1:-1]

        # --- Layer 0: contract the feature dim of x directly (q @ k^T pattern).
        # Result is feature-major (out0, tb): batch lives in the lane axis from
        # here on, so no transpose of x is ever materialized.
        w0 = p[0][...]                                   # (out0, in0)
        b0 = p[1][...]                                   # (out0, 1) f32
        h = jax.lax.dot_general(
            w0, x_ref[...],
            dimension_numbers=(((1,), (1,)), ((), ())),
            preferred_element_type=jnp.float32) + b0     # (out0, tb) f32
        h = jnp.maximum(h, 0.0)

        # --- Remaining hidden layers: (out_i, in_i) @ (in_i, tb) on the MXU.
        for i in range(1, num_layers - 1):
            w = p[2 * i][...]                            # (out_i, in_i)
            b = p[2 * i + 1][...]                        # (out_i, 1) f32
            rhs = h if h.dtype == w.dtype else h.astype(w.dtype)
            h = jnp.dot(w, rhs, preferred_element_type=jnp.float32) + b
            h = jnp.maximum(h, 0.0)

        # --- Final Linear(hidden_last, 1): VPU broadcast-mul + sublane reduce,
        # producing a lane-dense (1, tb) row (no degenerate N=1 MXU matmul).
        w_last = p[-2][...]                              # (hidden_last, 1) f32
        b_last = p[-1][...]                              # (1, 1) f32
        z = jnp.sum(h * w_last, axis=0, keepdims=True) + b_last   # (1, tb) f32

        # Exact sigmoid (approx reciprocal previously broke the 1e-3 check).
        y = 1.0 / (1.0 + jnp.exp(-z))
        o_ref[...] = y.reshape(o_ref.shape).astype(o_ref.dtype)

    return kernel


@functools.partial(jax.jit, static_argnames=("block_batch", "compute_dtype"))
def mlp_forward(x, params, *, block_batch=4096, compute_dtype=jnp.float32):
    """Run the MLP forward pass in one batch-tiled Pallas call.

    x:      (batch, input_dim) f32
    params: flat tuple (W0, b0, ..., W{L-1}, b{L-1}); Wi: (in_i, out_i), bi: (1, out_i)
    returns (batch, 1) f32 in [0, 1]
    """
    num_layers = len(params) // 2
    assert num_layers >= 2, "NeuralNetwork requires at least one hidden layer"
    batch, input_dim = x.shape

    # --- Prepare parameters (feature-major / transposed layout).
    #  Hidden weights in compute_dtype (bf16 halves their DMA + feeds bf16 MXU),
    #  biases f32 columns; last-layer weight/bias kept f32 (VPU epilogue).
    prepared = []
    for i in range(num_layers - 1):
        w, b = params[2 * i], params[2 * i + 1]
        prepared.append(jnp.asarray(w).T.astype(compute_dtype))            # (out_i, in_i)
        prepared.append(jnp.asarray(b).reshape(-1, 1).astype(jnp.float32))  # (out_i, 1)
    w_last, b_last = params[-2], params[-1]
    prepared.append(jnp.asarray(w_last).reshape(-1, 1).astype(jnp.float32))  # (H_last, 1)
    prepared.append(jnp.asarray(b_last).reshape(1, 1).astype(jnp.float32))   # (1, 1)

    # --- Batch tiling: large tiles (per-step overhead dominates this tiny MLP),
    # but keep >=2 tiles when the batch is big enough so v7x's two TensorCores
    # can split the "parallel" grid axis. Tight padding: tb tracks the batch.
    n_tiles = max(1, _ceil_div(batch, block_batch))
    if batch >= 32:
        n_tiles = max(n_tiles, 2)
    tb = _round_up(_ceil_div(batch, n_tiles), 16)   # 16: sublane-safe for f32 & bf16
    n_tiles = _ceil_div(batch, tb)
    padded_batch = n_tiles * tb

    # x is the only large HBM stream: cast once here (bf16 halves its traffic).
    x = x.astype(compute_dtype)
    if padded_batch != batch:
        x = jnp.pad(x, ((0, padded_batch - batch), (0, 0)))

    in_specs = [pl.BlockSpec((tb, input_dim), lambda i: (i, 0))]   # streams per step
    for a in prepared:
        in_specs.append(pl.BlockSpec(a.shape, lambda i: (0, 0)))   # VMEM-resident
    # Lane-dense output: one (1, tb) row per tile; batch sits in the lane axis.
    out_spec = pl.BlockSpec((1, 1, tb), lambda i: (i, 0, 0))

    # Advisory cost estimate so XLA schedules sensibly around the custom call.
    layer_shapes = [jnp.asarray(p).shape for p in params[0::2]]
    flops = 2 * batch * sum(int(s[0]) * int(s[1]) for s in layer_shapes)
    bytes_accessed = (padded_batch * input_dim * jnp.dtype(compute_dtype).itemsize
                      + sum(int(a.size) * a.dtype.itemsize for a in prepared)
                      + padded_batch * 4)
    cost = pl.CostEstimate(flops=int(flops), transcendentals=int(batch),
                           bytes_accessed=int(bytes_accessed))

    out = pl.pallas_call(
        _make_mlp_kernel(num_layers),
        out_shape=jax.ShapeDtypeStruct((n_tiles, 1, tb), jnp.float32),
        grid=(n_tiles,),
        in_specs=in_specs,
        out_specs=out_spec,
        compiler_params=pltpu.CompilerParams(
            dimension_semantics=("parallel",)),   # shard batch tiles across TCs (v7x)
        cost_estimate=cost,
    )(x, *prepared)

    return out.reshape(-1)[:batch].reshape(batch, 1)


def init_params(key, input_dim, hidden_dims):
    """Deterministic parameter init (uniform, PyTorch-Linear-like fan-in scaling)."""
    dims = [input_dim] + list(hidden_dims) + [1]
    params = []
    for i in range(len(dims) - 1):
        key, kw, kb = jax.random.split(key, 3)
        fan_in, fan_out = dims[i], dims[i + 1]
        bound = 1.0 / jnp.sqrt(jnp.float32(fan_in))
        w = jax.random.uniform(kw, (fan_in, fan_out), jnp.float32, -bound, bound)
        b = jax.random.uniform(kb, (1, fan_out), jnp.float32, -bound, bound)
        params.extend([w, b])
    return tuple(params)


def reference_forward(x, params):
    """Pure-JAX reference for correctness checking."""
    num_layers = len(params) // 2
    h = x
    for i in range(num_layers):
        w, b = params[2 * i], params[2 * i + 1]
        h = h @ w + b
        if i < num_layers - 1:
            h = jnp.maximum(h, 0.0)
    return jax.nn.sigmoid(h)


if __name__ == "__main__":
    # Module config: input_dim=32, hidden_dims=[64, 32], dropout_rates=[0.1, 0.1],
    # activation='relu' (dropout is identity at inference).
    input_dim = 32
    hidden_dims = [64, 32]

    key = jax.random.PRNGKey(0)
    key, kx1, kx2 = jax.random.split(key, 3)
    params = init_params(key, input_dim, hidden_dims)

    # Small deterministic check (single grid step, padded ragged tile).
    x_small = jax.random.normal(kx1, (8, input_dim), dtype=jnp.float32)
    out_small = jax.block_until_ready(mlp_forward(x_small, params))
    ref_small = reference_forward(x_small, params)
    assert out_small.shape == (8, 1)
    assert jnp.allclose(out_small, ref_small, atol=1e-3, rtol=0), \
        "Pallas output mismatch vs reference (f32, small batch)"

    # Multi-tile + ragged batch (exercises grid tiling, tight padding, resident weights).
    x_big = jax.random.normal(kx2, (600, input_dim), dtype=jnp.float32)
    out_big = jax.block_until_ready(mlp_forward(x_big, params, block_batch=256))
    ref_big = reference_forward(x_big, params)
    assert out_big.shape == (600, 1)
    assert jnp.allclose(out_big, ref_big, atol=1e-3, rtol=0), \
        "Pallas output mismatch vs reference (f32, tiled batch)"

    # Default (large-tile) path.
    out_def = jax.block_until_ready(mlp_forward(x_big, params))
    assert jnp.allclose(out_def, ref_big, atol=1e-3, rtol=0), \
        "Pallas output mismatch vs reference (f32, default tile)"

    # bf16 weight + bf16 x streaming path (memory-traffic win; epilogue stays f32).
    out_bf16 = jax.block_until_ready(
        mlp_forward(x_big, params, block_batch=256, compute_dtype=jnp.bfloat16))
    assert jnp.allclose(out_bf16, ref_big, atol=3e-2, rtol=0), \
        "Pallas output mismatch vs reference (bf16 weights/activations)"

    print("KERNEL_OK")
</pallas_src>

<mosaic_0001>
module attributes {stable_mosaic.version = 11 : i64} {
  func.func @kernel(%arg0: i32, %arg1: memref<16x32xf32, #tpu.memory_space<vmem>>, %arg2: memref<64x32xf32, #tpu.memory_space<vmem>>, %arg3: memref<64x1xf32, #tpu.memory_space<vmem>>, %arg4: memref<32x64xf32, #tpu.memory_space<vmem>>, %arg5: memref<32x1xf32, #tpu.memory_space<vmem>>, %arg6: memref<32x1xf32, #tpu.memory_space<vmem>>, %arg7: memref<1x1xf32, #tpu.memory_space<vmem>>, %arg8: memref<1x1x16xf32, #tpu.memory_space<vmem>>) attributes {dimension_semantics = [#tpu.dimension_semantics<parallel>], iteration_bounds = array<i64: 1>, scalar_prefetch = 0 : i64, scratch_operands = 0 : i64, tpu.core_type = #tpu.core_type<tc>, window_params = [{transform_indices = @transform_0, window_bounds = array<i64: 16, 32>}, {pipeline_mode = #tpu.pipeline_mode<synchronous>, transform_indices = @transform_1, window_bounds = array<i64: 64, 32>}, {pipeline_mode = #tpu.pipeline_mode<synchronous>, transform_indices = @transform_2, window_bounds = array<i64: 64, 1>}, {pipeline_mode = #tpu.pipeline_mode<synchronous>, transform_indices = @transform_3, window_bounds = array<i64: 32, 64>}, {pipeline_mode = #tpu.pipeline_mode<synchronous>, transform_indices = @transform_4, window_bounds = array<i64: 32, 1>}, {pipeline_mode = #tpu.pipeline_mode<synchronous>, transform_indices = @transform_5, window_bounds = array<i64: 32, 1>}, {pipeline_mode = #tpu.pipeline_mode<synchronous>, transform_indices = @transform_6, window_bounds = array<i64: 1, 1>}, {transform_indices = @transform_7, window_bounds = array<i64: 1, 1, 16>}]} {
    %c0 = arith.constant 0 : index
    %c0_0 = arith.constant 0 : index
    %0 = vector.load %arg2[%c0, %c0_0] : memref<64x32xf32, #tpu.memory_space<vmem>>, vector<64x32xf32>
    %c0_1 = arith.constant 0 : index
    %c0_2 = arith.constant 0 : index
    %1 = vector.load %arg3[%c0_1, %c0_2] : memref<64x1xf32, #tpu.memory_space<vmem>>, vector<64x1xf32>
    %c0_3 = arith.constant 0 : index
    %c0_4 = arith.constant 0 : index
    %2 = vector.load %arg1[%c0_3, %c0_4] : memref<16x32xf32, #tpu.memory_space<vmem>>, vector<16x32xf32>
    %cst = arith.constant dense<0.000000e+00> : vector<64x16xf32>
    %3 = tpu.matmul %0, %2, %cst {dimension_numbers = #tpu.dot_dimension_numbers<[1], [1], [0], [0], [0, 0, 1, 0], [], []>} : vector<64x32xf32>, vector<16x32xf32>, vector<64x16xf32> -> vector<64x16xf32>
    %4 = vector.broadcast %1 : vector<64x1xf32> to vector<64x16xf32>
    %5 = arith.addf %3, %4 : vector<64x16xf32>
    %cst_5 = arith.constant 0.000000e+00 : f32
    %6 = vector.broadcast %cst_5 : f32 to vector<64x16xf32>
    %7 = arith.maximumf %5, %6 : vector<64x16xf32>
    %c0_6 = arith.constant 0 : index
    %c0_7 = arith.constant 0 : index
    %8 = vector.load %arg4[%c0_6, %c0_7] : memref<32x64xf32, #tpu.memory_space<vmem>>, vector<32x64xf32>
    %c0_8 = arith.constant 0 : index
    %c0_9 = arith.constant 0 : index
    %9 = vector.load %arg5[%c0_8, %c0_9] : memref<32x1xf32, #tpu.memory_space<vmem>>, vector<32x1xf32>
    %cst_10 = arith.constant dense<0.000000e+00> : vector<32x16xf32>
    %10 = tpu.matmul %8, %7, %cst_10 {dimension_numbers = #tpu.dot_dimension_numbers<[1], [0], [0], [1], [0, 0, 1, 1], [], []>} : vector<32x64xf32>, vector<64x16xf32>, vector<32x16xf32> -> vector<32x16xf32>
    %11 = vector.broadcast %9 : vector<32x1xf32> to vector<32x16xf32>
    %12 = arith.addf %10, %11 : vector<32x16xf32>
    %cst_11 = arith.constant 0.000000e+00 : f32
    %13 = vector.broadcast %cst_11 : f32 to vector<32x16xf32>
    %14 = arith.maximumf %12, %13 : vector<32x16xf32>
    %c0_12 = arith.constant 0 : index
    %c0_13 = arith.constant 0 : index
    %15 = vector.load %arg6[%c0_12, %c0_13] : memref<32x1xf32, #tpu.memory_space<vmem>>, vector<32x1xf32>
    %c0_14 = arith.constant 0 : index
    %c0_15 = arith.constant 0 : index
    %16 = vector.load %arg7[%c0_14, %c0_15] : memref<1x1xf32, #tpu.memory_space<vmem>>, vector<1x1xf32>
    %17 = vector.broadcast %15 : vector<32x1xf32> to vector<32x16xf32>
    %18 = arith.mulf %14, %17 : vector<32x16xf32>
    %cst_16 = arith.constant dense<0.000000e+00> : vector<16xf32>
    %19 = vector.multi_reduction <add>, %18, %cst_16 [0] : vector<32x16xf32> to vector<16xf32>
    %20 = vector.shape_cast %19 : vector<16xf32> to vector<1x16xf32>
    %21 = vector.broadcast %16 : vector<1x1xf32> to vector<1x16xf32>
    %22 = arith.addf %20, %21 : vector<1x16xf32>
    %cst_17 = arith.constant 0.000000e+00 : f32
    %23 = vector.broadcast %cst_17 : f32 to vector<1x16xf32>
    %24 = arith.subf %23, %22 : vector<1x16xf32>
    %25 = math.exp %24 : vector<1x16xf32>
    %cst_18 = arith.constant 1.000000e+00 : f32
    %26 = vector.broadcast %cst_18 : f32 to vector<1x16xf32>
    %27 = arith.addf %26, %25 : vector<1x16xf32>
    %cst_19 = arith.constant 1.000000e+00 : f32
    %28 = vector.broadcast %cst_19 : f32 to vector<1x16xf32>
    %29 = arith.divf %28, %27 : vector<1x16xf32>
    %30 = vector.shape_cast %29 : vector<1x16xf32> to vector<1x1x16xf32>
    %c0_20 = arith.constant 0 : index
    %c0_21 = arith.constant 0 : index
    %c0_22 = arith.constant 0 : index
    %31 = vector.load %arg8[%c0_20, %c0_21, %c0_22] : memref<1x1x16xf32, #tpu.memory_space<vmem>>, vector<1x1x16xf32>
    tpu.vector_store %arg8[%c0_20, %c0_21, %c0_22], %30 {strides = array<i32>} : memref<1x1x16xf32, #tpu.memory_space<vmem>>, vector<1x1x16xf32>,
    return
  }
  func.func @transform_0(%arg0: i32) -> (i32, i32) {
    %c0_i32 = arith.constant 0 : i32
    %c0_i32_0 = arith.constant 0 : i32
    return %arg0, %c0_i32 : i32, i32
  }
  func.func @transform_1(%arg0: i32) -> (i32, i32) {
    %c0_i32 = arith.constant 0 : i32
    %c0_i32_0 = arith.constant 0 : i32
    %c0_i32_1 = arith.constant 0 : i32
    return %c0_i32, %c0_i32_0 : i32, i32
  }
  func.func @transform_2(%arg0: i32) -> (i32, i32) {
    %c0_i32 = arith.constant 0 : i32
    %c0_i32_0 = arith.constant 0 : i32
    %c0_i32_1 = arith.constant 0 : i32
    return %c0_i32, %c0_i32_0 : i32, i32
  }
  func.func @transform_3(%arg0: i32) -> (i32, i32) {
    %c0_i32 = arith.constant 0 : i32
    %c0_i32_0 = arith.constant 0 : i32
    %c0_i32_1 = arith.constant 0 : i32
    return %c0_i32, %c0_i32_0 : i32, i32
  }
  func.func @transform_4(%arg0: i32) -> (i32, i32) {
    %c0_i32 = arith.constant 0 : i32
    %c0_i32_0 = arith.constant 0 : i32
    %c0_i32_1 = arith.constant 0 : i32
    return %c0_i32, %c0_i32_0 : i32, i32
  }
  func.func @transform_5(%arg0: i32) -> (i32, i32) {
    %c0_i32 = arith.constant 0 : i32
    %c0_i32_0 = arith.constant 0 : i32
    %c0_i32_1 = arith.constant 0 : i32
    return %c0_i32, %c0_i32_0 : i32, i32
  }
  func.func @transform_6(%arg0: i32) -> (i32, i32) {
    %c0_i32 = arith.constant 0 : i32
    %c0_i32_0 = arith.constant 0 : i32
    %c0_i32_1 = arith.constant 0 : i32
    return %c0_i32, %c0_i32_0 : i32, i32
  }
  func.func @transform_7(%arg0: i32) -> (i32, i32, i32) {
    %c0_i32 = arith.constant 0 : i32
    %c0_i32_0 = arith.constant 0 : i32
    %c0_i32_1 = arith.constant 0 : i32
    return %arg0, %c0_i32, %c0_i32_0 : i32, i32, i32
  }
}

</mosaic_0001>

<bundles_post_ra>
// kernel: mlp_forward.1
= control target key start
LH: loop header
LB: loop body
LE: loop exit
PB: predicated region body
PF: predicated region fallthrough
CT: control target
= control target key end

     0   :  { %vm86_vm0 = vcmask 261120   ;;  %v347_v1 = vmov 0   ;;  %vm194_vm1 = vcmask 523264   ;;  %vm269_vm2 = vcmask 130048   ;;  %s496_s0 = inlined_call_operand.vmem [shape: f32[16,32], index: 0, kind: input, shape index: {}]   ;;  %s497_s2 = inlined_call_operand.vmem [shape: f32[64,1], index: 2, kind: input, shape index: {}]   ;;  %s498_s1 = inlined_call_operand.vmem [shape: f32[64,32], index: 1, kind: input, shape index: {}]   ;;  %s499_s6 = inlined_call_operand.<no memory space> [shape: f32[1,1], index: 6, kind: input, shape index: {}]   ;;  %s500_s4 = inlined_call_operand.vmem [shape: f32[32,1], index: 4, kind: input, shape index: {}]   ;;  %s501_s5 = inlined_call_operand.vmem [shape: f32[32,1], index: 5, kind: input, shape index: {}]   ;;  %s502_s3 = inlined_call_operand.vmem [shape: f32[32,64], index: 3, kind: input, shape index: {}]   ;;  %s503_s7 = inlined_call_operand.vmem [shape: f32[1,1,16], index: 7, kind: output, shape index: {}]  }
   0x1   :  { %v45_v0 = vld [vmem:[%s496_s0 + $0x8] sm:$0xff]  ;;  %340 = vset.pattern.permute.xlu0 %v347_v1  ;;  %341 = vset.pattern.permute.xlu1 %v347_v1  ;;  %v43_v2 = vld [vmem:[%s497_s2 + $0x38] sm:$0xff]  ;;  %v44_v4 = vld [vmem:[%s496_s0] sm:$0xff]  ;;  %v12_v10 = vstv %s499_s6  ;;  %vm309_vm6 = vcmask 122880  }
   0x2   :  { %329 = vmatpush.xpose.msk.msra.mxu2 %vm86_vm0, %v45_v0  ;;  %v41_v3 = vld [vmem:[%s497_s2 + $0x28] sm:$0xff]  ;;  %315 = vmatpush.xpose.msk.msra.mxu0 %vm86_vm0, %v45_v0  ;;  %v31_v5 = vld [vmem:[%s498_s1 + $0x18] sm:$0xff]  ;;  %v28_v6 = vld [vmem:[%s498_s1] sm:$0xff]  ;;  %13 = vst [vmem:[#allocation2] sm:$0x1] %v12_v10 }
   0x3   :  { %83 = vperm.xlu0 %340, %v43_v2   ;;  %73 = vperm.xlu1 %341, %v41_v3   ;;  %v42_v7 = vld [vmem:[%s497_s2 + $0x30] sm:$0xff]  ;;  %v40_v8 = vld [vmem:[%s497_s2 + $0x20] sm:$0xff]  ;;  %v39_v9 = vld [vmem:[%s497_s2 + $0x18] sm:$0xff] }
   0x4   :  { %342 = vset.pattern.permute.xlu2 %v347_v1  ;;  %v32_v11 = vld [vmem:[%s498_s1 + $0x20] sm:$0xff]  ;;  %v29_v12 = vld [vmem:[%s498_s1 + $0x8] sm:$0xff]  ;;  %v38_v15 = vld [vmem:[%s497_s2 + $0x10] sm:$0xff] }
   0x5   :  { %63 = vperm.xlu2 %342, %v39_v9   ;;  %v37_v13 = vld [vmem:[%s497_s2 + $0x8] sm:$0xff]  ;;  %v36_v14 = vld [vmem:[%s497_s2] sm:$0xff]  ;;  %v30_v17 = vld [vmem:[%s498_s1 + $0x10] sm:$0xff] }
   0x6   :  { %330 = vmatpush.xpose.msk.msra.mxu2 %vm86_vm0, %v44_v4  ;;  %316 = vmatpush.xpose.msk.msra.mxu0 %vm86_vm0, %v44_v4  ;;  %v33_v16 = vld [vmem:[%s498_s1 + $0x28] sm:$0xff]  ;;  %v172_v19 = vld [vmem:[%s500_s4 + $0x10] sm:$0xff]  ;;  %v170_v20 = vld [vmem:[%s500_s4] sm:$0xff] }
   0x7   :  { %v171_v18 = vld [vmem:[%s500_s4 + $0x8] sm:$0xff]  ;;  %v34_v21 = vld [vmem:[%s498_s1 + $0x30] sm:$0xff]  ;;  %v240_v22 = vld [vmem:[%s501_s5] sm:$0xff] }
   0x8   :  { %v241_v23 = vld [vmem:[%s501_s5 + $0x8] sm:$0xff]  ;;  %v173_v24 = vld [vmem:[%s500_s4 + $0x18] sm:$0xff]  ;;  %v242_v28 = vld [vmem:[%s501_s5 + $0x10] sm:$0xff] }
   0x9   :  { %320 = vmatmul.msk.f32.vlgmr.msra.gmra.mxu2 %vm86_vm0, %v31_v5  ;;  %317 = vmatmul.msk.f32.vlgmr.msra.gmra.mxu0 %vm86_vm0, %v28_v6  ;;  %v35_v25 = vld [vmem:[%s498_s1 + $0x38] sm:$0xff]  ;;  %v244_v27 = vld [vmem:[#allocation2] sm:$0x1]  ;;  %v167_v62 = vld [vmem:[%s502_s3 + $0x8] sm:$0xff] }
   0xa   :  { %v243_v26 = vld [vmem:[%s501_s5 + $0x18] sm:$0xff]  ;;  %v166_v61 = vld [vmem:[%s502_s3] sm:$0xff]  ;;  %v168_v63 = vld [vmem:[%s502_s3 + $0x10] sm:$0xff] }
   0xb   :  { %78 = vperm.xlu0 %340, %v42_v7   ;;  %68 = vperm.xlu1 %341, %v40_v8   ;;  %v169_v0 = vld [vmem:[%s502_s3 + $0x18] sm:$0xff] }
   0xd   :  { %58 = vperm.xlu2 %342, %v38_v15  }
  0x11   :  { %321 = vmatmul.msk.f32.gmra.mxu2 %vm86_vm0, %v32_v11  ;;  %318 = vmatmul.msk.f32.gmra.mxu0 %vm86_vm0, %v29_v12 }
  0x13   :  { %53 = vperm.xlu0 %340, %v37_v13   ;;  %48 = vperm.xlu1 %341, %v36_v14  }
  0x15   :  { %176 = vperm.xlu2 %342, %v170_v20  }
  0x19   :  { %322 = vmatmul.msk.f32.gmra.mxu2 %vm86_vm0, %v33_v16  ;;  %319 = vmatmul.msk.f32.gmra.mxu0 %vm86_vm0, %v30_v17 }
  0x1b   :  { %181 = vperm.xlu0 %340, %v171_v18   ;;  %186 = vperm.xlu1 %341, %v172_v19  }
  0x1d   :  { %191 = vperm.xlu2 %342, %v173_v24  }
  0x21   :  { %323 = vmatmul.msk.f32.gmra.mxu2 %vm86_vm0, %v34_v21 }
  0x23   :  { %247 = vperm.xlu0 %340, %v240_v22   ;;  %252 = vperm.xlu1 %341, %v241_v23  }
  0x25   :  { %257 = vperm.xlu2 %342, %v242_v28  }
  0x29   :  { %324 = vmatmul.msk.f32.gmra.mxu2 %vm86_vm0, %v35_v25 }
  0x2b   :  { %262 = vperm.xlu0 %340, %v243_v26   ;;  %285 = vperm.xlu1 %341, %v244_v27  }
  0x5f   :  { %v64_v37 = vpop.permute.xlu2 %63 }
  0x67   :  { %v59_v50 = vpop.permute.xlu2 %58 }
  0x6f   :  { %v177_v1 = vpop.permute.xlu2 %176 }
  0x75   :  { %v84_v33 = vpop.permute.xlu0 %83  ;;  %v74_v34 = vpop.permute.xlu1 %73 }
  0x77   :  { %v192_v5 = vpop.permute.xlu2 %191 }
  0x7d   :  { %v79_v38 = vpop.permute.xlu0 %78  ;;  %v69_v42 = vpop.permute.xlu1 %68 }
  0x7f   :  { %v258_v17 = vpop.permute.xlu2 %257 }
  0x85   :  { %v54_v53 = vpop.permute.xlu0 %53  ;;  %v49_v56 = vpop.permute.xlu1 %48 }
  0x86   :  { %v134_v32 = vpop.f32.mrf.mxu0 }
  0x87   :  { %v135_v57 = vadd.f32 %v134_v32, %v49_v56 }
  0x89   :  { %v158_v60 = vmax.f32 %v135_v57, 0.0 }
  0x8c   :  { %v143_v29 = vpop.f32.mrf.mxu2 }
  0x8d   :  { %v144_v48 = vadd.f32 %v143_v29, %v64_v37  ;;  %v182_v2 = vpop.permute.xlu0 %181  ;;  %v187_v4 = vpop.permute.xlu1 %186 }
  0x8e   :  { %v137_v36 = vpop.f32.mrf.mxu0 }
  0x8f   :  { %v161_v54 = vmax.f32 %v144_v48, 0.0  ;;  %v138_v55 = vadd.f32 %v137_v36, %v54_v53 }
  0x91   :  { %v159_v59 = vmax.f32 %v138_v55, 0.0 }
  0x94   :  { %v146_v30 = vpop.f32.mrf.mxu2 }
  0x95   :  { %v147_v45 = vadd.f32 %v146_v30, %v69_v42  ;;  %v248_v12 = vpop.permute.xlu0 %247  ;;  %v253_v15 = vpop.permute.xlu1 %252 }
  0x96   :  { %v140_v47 = vpop.f32.mrf.mxu0 }
  0x97   :  { %v162_v51 = vmax.f32 %v147_v45, 0.0  ;;  %v141_v52 = vadd.f32 %v140_v47, %v59_v50 }
  0x99   :  { %v160_v58 = vmax.f32 %v141_v52, 0.0 }
  0x9c   :  { %v149_v31 = vpop.f32.mrf.mxu2 }
  0x9d   :  { %v150_v43 = vadd.f32 %v149_v31, %v74_v34  ;;  %v263_v26 = vpop.permute.xlu0 %262  ;;  %v286_v36 = vpop.permute.xlu1 %285 }
  0x9f   :  { %v163_v49 = vmax.f32 %v150_v43, 0.0 }
  0xa4   :  { %v152_v35 = vpop.f32.mrf.mxu2 }
  0xa5   :  { %v153_v40 = vadd.f32 %v152_v35, %v79_v38  ;;  %v288_v38 = vperm.slane %v286_v36, 0 }
  0xa7   :  { %v164_v46 = vmax.f32 %v153_v40, 0.0 }
  0xac   :  { %v155_v39 = vpop.f32.mrf.mxu2 }
  0xad   :  { %v156_v41 = vadd.f32 %v155_v39, %v84_v33 }
  0xaf   :  { %v165_v44 = vmax.f32 %v156_v41, 0.0 }
  0xb1   :  { %215 = vmatpush.msra.mxu1 %v165_v44  ;;  %331 = vmatpush.msra.mxu3 %v165_v44 }
  0xb3   :  { %216 = vmatpush.msra.mxu1 %v164_v46  ;;  %332 = vmatpush.msra.mxu3 %v164_v46 }
  0xb5   :  { %217 = vmatpush.msra.mxu1 %v163_v49  ;;  %333 = vmatpush.msra.mxu3 %v163_v49 }
  0xb7   :  { %218 = vmatpush.msra.mxu1 %v162_v51  ;;  %334 = vmatpush.msra.mxu3 %v162_v51 }
  0xb9   :  { %219 = vmatpush.msra.mxu1 %v161_v54  ;;  %335 = vmatpush.msra.mxu3 %v161_v54 }
  0xbb   :  { %220 = vmatpush.msra.mxu1 %v160_v58  ;;  %336 = vmatpush.msra.mxu3 %v160_v58 }
  0xbd   :  { %221 = vmatpush.msra.mxu1 %v159_v59  ;;  %337 = vmatpush.msra.mxu3 %v159_v59 }
  0xbf   :  { %222 = vmatpush.msra.mxu1 %v158_v60  ;;  %338 = vmatpush.msra.mxu3 %v158_v60 }
  0xc0   :  { %325 = vmatmul.msk.f32.vlgmr.msra.gmra.mxu1 %vm194_vm1, %v166_v61  ;;  %326 = vmatmul.msk.f32.vlgmr.msra.gmra.mxu3 %vm194_vm1, %v167_v62 }
  0xc8   :  { %327 = vmatmul.msk.f32.gmra.mxu3 %vm194_vm1, %v168_v63 }
  0xd0   :  { %328 = vmatmul.msk.f32.gmra.mxu3 %vm194_vm1, %v169_v0 }
 0x13d   :  { %v224_v6 = vpop.f32.mrf.mxu1 }
 0x13e   :  { %v225_v8 = vadd.f32 %v224_v6, %v177_v1 }
 0x140   :  { %v236_v13 = vmax.f32 %v225_v8, 0.0 }
 0x142   :  { %v265_v18 = vmul.f32 %v248_v12, %v236_v13 }
 0x143   :  { %v227_v3 = vpop.f32.mrf.mxu3 }
 0x144   :  { %v228_v7 = vadd.f32 %v227_v3, %v182_v2  ;;  %v270_v23 = vsel %vm269_vm2, %v265_v18, 0.0 }
 0x146   :  { %v237_v10 = vmax.f32 %v228_v7, 0.0 }
 0x148   :  { %v266_v16 = vmul.f32 %v253_v15, %v237_v10 }
 0x14a   :  { %v271_v21 = vsel %vm269_vm2, %v266_v16, 0.0 }
 0x14b   :  { %v230_v9 = vpop.f32.mrf.mxu3  ;;  %v272_v27 = vadd.f32 %v271_v21, %v270_v23 }
 0x14c   :  { %v231_v11 = vadd.f32 %v230_v9, %v187_v4 }
 0x14e   :  { %v238_v14 = vmax.f32 %v231_v11, 0.0 }
 0x150   :  { %v267_v19 = vmul.f32 %v258_v17, %v238_v14 }
 0x152   :  { %v273_v24 = vsel %vm269_vm2, %v267_v19, 0.0 }
 0x153   :  { %v233_v20 = vpop.f32.mrf.mxu3  ;;  %v274_v29 = vadd.f32 %v273_v24, %v272_v27 }
 0x154   :  { %v234_v22 = vadd.f32 %v233_v20, %v192_v5 }
 0x156   :  { %v239_v25 = vmax.f32 %v234_v22, 0.0 }
 0x158   :  { %v268_v28 = vmul.f32 %v263_v26, %v239_v25 }
 0x15a   :  { %v275_v30 = vsel %vm269_vm2, %v268_v28, 0.0 }
 0x15b   :  { %v276_v31 = vadd.f32 %v275_v30, %v274_v29 }
 0x15d   :  { %v277_v32 = vrot.slane %v276_v31, 4 }
 0x15f   :  { %v278_v33 = vadd.f32 %v277_v32, %v276_v31 }
 0x161   :  { %v279_v34 = vrot.slane %v278_v33, 2 }
 0x163   :  { %v280_v35 = vadd.f32 %v279_v34, %v278_v33 }
 0x165   :  { %v281_v37 = vrot.slane %v280_v35, 1 }
 0x167   :  { %v282_v39 = vadd.f32 %v281_v37, %v280_v35 }
 0x169   :  { %v289_v40 = vadd.f32 %v288_v38, %v282_v39 }
 0x16b   :  { %v290_v41 = vsub.f32 0.0, %v289_v40 }
 0x16d   :  { %v291_v42 = vmul.f32 1.442695, %v290_v41 }
 0x16f   :  { %343 = vpow2.f32 %v291_v42 }
 0x175   :  { %v344_v43 = vpop.eup %343 }
 0x176   :  { %v293_v44 = vadd.f32 1.0, %v344_v43 }
 0x178   :  { %345 = vrcp.f32 %v293_v44  ;;  %v305_v48 = vand.u32 2147483648, %v293_v44  ;;  %v303_v50 = vand.u32 2147483647, %v293_v44  ;;  %vm299_vm4 = vweird.f32 %v293_v44 }
 0x17a   :  { %v306_v52 = vor.u32 1.1754944e-38, %v305_v48  ;;  %vm304_vm7 = vcmp.eq.f32.partialorder %v303_v50, 8.507059e+37 }
 0x17e   :  { %v346_v45 = vpop.eup %345 }
 0x17f   :  { %v295_v46 = vmul.f32 %v346_v45, %v293_v44  ;;  %vm300_vm3 = vweird.f32 %v346_v45 }
 0x180   :  { %vm301_vm5 = vmor %vm299_vm4, %vm300_vm3 }
 0x181   :  { %v296_v47 = vsub.f32 1.0, %v295_v46 }
 0x183   :  { %v297_v49 = vmul.f32 %v346_v45, %v296_v47 }
 0x185   :  { %v298_v51 = vadd.f32 %v346_v45, %v297_v49 }
 0x187   :  { %v302_v53 = vsel %vm301_vm5, %v346_v45, %v298_v51 }
 0x188   :  { %v307_v54 = vsel %vm304_vm7, %v306_v52, %v302_v53 }
 0x189   :  { %310 = vst.msk [vmem:[%s503_s7] sm:$0x1] %vm309_vm6, %v307_v54 }

</bundles_post_ra>
